<compile_context>
chip_gen: v5e
topology: v5e:2x2
jax: 0.10.0
libtpu: 0.0.40
codegen_flags: <defaults>
</compile_context>

<pallas_src>
import functools

import jax
import jax.numpy as jnp
from jax.experimental import pallas as pl
from jax.experimental.pallas import tpu as pltpu

# ---------------------------------------------------------------------------
# Problem sizes (CartPole-v1: 4 state dims, 2 actions), hidden = 32.
# ---------------------------------------------------------------------------
INPUTS = 4
HIDDEN = 32
OUTPUTS = 2

LANE = 128          # last-dim padding target
SUBLANE = 8         # second-to-last padding target
MAX_BATCH_TILE = 512


def _round_up(n, m):
    return ((n + m - 1) // m) * m


def _pad2d(a, rows, cols):
    r, c = a.shape
    return jnp.pad(a, ((0, rows - r), (0, cols - c)))


# ---------------------------------------------------------------------------
# Pallas kernel: fused 3-layer MLP (bf16 matmuls, f32 bias/ReLU epilogue).
# ---------------------------------------------------------------------------
def dqn_kernel(x_ref, w1_ref, b1_ref, w2_ref, b2_ref, w3_ref, b3_ref, o_ref):
    # x_ref: (TB, INPUTS) bf16; w*: bf16 (padded); b*: f32 (padded).
    h1 = jnp.dot(x_ref[...], w1_ref[...], preferred_element_type=jnp.float32)
    h1 = jnp.maximum(h1 + b1_ref[...], 0.0)                        # f32 epilogue
    h2 = jnp.dot(h1.astype(jnp.bfloat16), w2_ref[...],
                 preferred_element_type=jnp.float32)
    h2 = jnp.maximum(h2 + b2_ref[...], 0.0)                        # f32 epilogue
    out = jnp.dot(h2.astype(jnp.bfloat16), w3_ref[...],
                  preferred_element_type=jnp.float32)
    o_ref[...] = (out + b3_ref[...]).astype(o_ref.dtype)


# ---------------------------------------------------------------------------
# One-time parameter preparation: pad to TPU tiles, cast weights to bf16.
# Call this once (outside the training/eval loop) and reuse the result.
# ---------------------------------------------------------------------------
def prepare_padded_params(params):
    inputs, hidden = params["w1"].shape
    outputs = params["w3"].shape[1]
    Hp = _round_up(hidden, LANE)
    Op = _round_up(outputs, LANE)
    return {
        "w1": _pad2d(params["w1"], inputs, Hp).astype(jnp.bfloat16),
        "w2": _pad2d(params["w2"], Hp, Hp).astype(jnp.bfloat16),
        "w3": _pad2d(params["w3"], Hp, Op).astype(jnp.bfloat16),
        "b1": _pad2d(params["b1"][None, :].astype(jnp.float32), 1, Hp),
        "b2": _pad2d(params["b2"][None, :].astype(jnp.float32), 1, Hp),
        "b3": _pad2d(params["b3"][None, :].astype(jnp.float32), 1, Op),
    }


# ---------------------------------------------------------------------------
# Forward pass.
# ---------------------------------------------------------------------------
@functools.partial(jax.jit, static_argnames=("outputs",))
def dqn_forward(x, padded, *, outputs=OUTPUTS):
    """Run DQN.forward(x) via one Pallas call.

    x:      (B, inputs) float32
    padded: output of prepare_padded_params (cached across calls)
    returns (B, outputs) float32
    """
    B, F = x.shape
    Hp = padded["w1"].shape[1]
    Op = padded["w3"].shape[1]

    # Batch tiling: single tile for small batches, 512-row tiles for training.
    TB = MAX_BATCH_TILE if B > MAX_BATCH_TILE else _round_up(B, SUBLANE)
    Bp = _round_up(B, TB)
    grid = (Bp // TB,)

    xp = x.astype(jnp.bfloat16)
    if Bp != B:
        xp = jnp.pad(xp, ((0, Bp - B), (0, 0)))

    resident = lambda shape: pl.BlockSpec(shape, lambda i: (0, 0))

    out_p = pl.pallas_call(
        dqn_kernel,
        out_shape=jax.ShapeDtypeStruct((Bp, Op), jnp.float32),
        grid=grid,
        in_specs=[
            pl.BlockSpec((TB, F), lambda i: (i, 0)),   # x tile (real feat width)
            resident((F, Hp)),                         # w1 (stays resident)
            resident((1, Hp)),                         # b1
            resident((Hp, Hp)),                        # w2
            resident((1, Hp)),                         # b2
            resident((Hp, Op)),                        # w3
            resident((1, Op)),                         # b3
        ],
        out_specs=pl.BlockSpec((TB, Op), lambda i: (i, 0)),  # lane-dense (128)
        compiler_params=pltpu.CompilerParams(
            dimension_semantics=("parallel",)),
    )(xp, padded["w1"], padded["b1"], padded["w2"], padded["b2"],
      padded["w3"], padded["b3"])

    return out_p[:B, :outputs]


# ---------------------------------------------------------------------------
# Deterministic parameter init (mimics nn.Linear default U(-1/sqrt(fan_in))),
# stored in (in, out) layout so each layer is y = x @ W + b.
# ---------------------------------------------------------------------------
def init_params(key, inputs=INPUTS, hidden=HIDDEN, outputs=OUTPUTS):
    keys = jax.random.split(key, 6)

    def linear(kw, kb, fan_in, fan_out):
        bound = 1.0 / jnp.sqrt(jnp.float32(fan_in))
        w = jax.random.uniform(kw, (fan_in, fan_out), jnp.float32, -bound, bound)
        b = jax.random.uniform(kb, (fan_out,), jnp.float32, -bound, bound)
        return w, b

    w1, b1 = linear(keys[0], keys[1], inputs, hidden)
    w2, b2 = linear(keys[2], keys[3], hidden, hidden)
    w3, b3 = linear(keys[4], keys[5], hidden, outputs)
    return {"w1": w1, "b1": b1, "w2": w2, "b2": b2, "w3": w3, "b3": b3}


def reference_forward(x, p):
    h1 = jnp.maximum(x @ p["w1"] + p["b1"], 0.0)
    h2 = jnp.maximum(h1 @ p["w2"] + p["b2"], 0.0)
    return h2 @ p["w3"] + p["b3"]


def reference_forward_bf16(x, p):
    dot = lambda a, b: jnp.dot(a.astype(jnp.bfloat16), b.astype(jnp.bfloat16),
                               preferred_element_type=jnp.float32)
    h1 = jnp.maximum(dot(x, p["w1"]) + p["b1"], 0.0)
    h2 = jnp.maximum(dot(h1, p["w2"]) + p["b2"], 0.0)
    return dot(h2, p["w3"]) + p["b3"]


if __name__ == "__main__":
    key = jax.random.PRNGKey(0)
    pkey, xkey = jax.random.split(key)

    params = init_params(pkey)
    padded = prepare_padded_params(params)   # one-time padding/casting

    batch = 2
    x = jax.random.normal(xkey, (batch, INPUTS), dtype=jnp.float32)

    out = dqn_forward(x, padded)
    out = jax.block_until_ready(out)

    assert out.shape == (batch, OUTPUTS), out.shape

    # Matches bf16-matmul reference closely (same math as the kernel).
    ref_bf16 = reference_forward_bf16(x, params)
    assert jnp.allclose(out, ref_bf16, atol=1e-3, rtol=1e-3), (out, ref_bf16)

    # Stays within bf16 rounding of the full-f32 PyTorch-equivalent forward.
    ref_f32 = reference_forward(x, params)
    assert jnp.allclose(out, ref_f32, atol=5e-2, rtol=5e-2), (out, ref_f32)

    print("KERNEL_OK")
</pallas_src>

<mosaic_0001>
module attributes {stable_mosaic.version = 11 : i64} {
  func.func @dqn_kernel(%arg0: i32, %arg1: memref<8x4xbf16, #tpu.memory_space<vmem>>, %arg2: memref<4x128xbf16, #tpu.memory_space<vmem>>, %arg3: memref<1x128xf32, #tpu.memory_space<vmem>>, %arg4: memref<128x128xbf16, #tpu.memory_space<vmem>>, %arg5: memref<1x128xf32, #tpu.memory_space<vmem>>, %arg6: memref<128x128xbf16, #tpu.memory_space<vmem>>, %arg7: memref<1x128xf32, #tpu.memory_space<vmem>>, %arg8: memref<8x128xf32, #tpu.memory_space<vmem>>) attributes {dimension_semantics = [#tpu.dimension_semantics<parallel>], iteration_bounds = array<i64: 1>, scalar_prefetch = 0 : i64, scratch_operands = 0 : i64, tpu.core_type = #tpu.core_type<tc>, window_params = [{transform_indices = @transform_0, window_bounds = array<i64: 8, 4>}, {pipeline_mode = #tpu.pipeline_mode<synchronous>, transform_indices = @transform_1, window_bounds = array<i64: 4, 128>}, {pipeline_mode = #tpu.pipeline_mode<synchronous>, transform_indices = @transform_2, window_bounds = array<i64: 1, 128>}, {pipeline_mode = #tpu.pipeline_mode<synchronous>, transform_indices = @transform_3, window_bounds = array<i64: 128, 128>}, {pipeline_mode = #tpu.pipeline_mode<synchronous>, transform_indices = @transform_4, window_bounds = array<i64: 1, 128>}, {pipeline_mode = #tpu.pipeline_mode<synchronous>, transform_indices = @transform_5, window_bounds = array<i64: 128, 128>}, {pipeline_mode = #tpu.pipeline_mode<synchronous>, transform_indices = @transform_6, window_bounds = array<i64: 1, 128>}, {transform_indices = @transform_7, window_bounds = array<i64: 8, 128>}]} {
    %c0 = arith.constant 0 : index
    %c0_0 = arith.constant 0 : index
    %0 = vector.load %arg1[%c0, %c0_0] : memref<8x4xbf16, #tpu.memory_space<vmem>>, vector<8x4xbf16>
    %c0_1 = arith.constant 0 : index
    %c0_2 = arith.constant 0 : index
    %1 = vector.load %arg2[%c0_1, %c0_2] : memref<4x128xbf16, #tpu.memory_space<vmem>>, vector<4x128xbf16>
    %cst = arith.constant dense<0.000000e+00> : vector<8x128xf32>
    %2 = tpu.matmul %0, %1, %cst {dimension_numbers = #tpu.dot_dimension_numbers<[1], [0], [0], [1], [0, 0, 1, 1], [], []>} : vector<8x4xbf16>, vector<4x128xbf16>, vector<8x128xf32> -> vector<8x128xf32>
    %c0_3 = arith.constant 0 : index
    %c0_4 = arith.constant 0 : index
    %3 = vector.load %arg3[%c0_3, %c0_4] : memref<1x128xf32, #tpu.memory_space<vmem>>, vector<1x128xf32>
    %4 = vector.broadcast %3 : vector<1x128xf32> to vector<8x128xf32>
    %5 = arith.addf %2, %4 : vector<8x128xf32>
    %cst_5 = arith.constant 0.000000e+00 : f32
    %6 = vector.broadcast %cst_5 : f32 to vector<8x128xf32>
    %7 = arith.maximumf %5, %6 : vector<8x128xf32>
    %8 = arith.truncf %7 : vector<8x128xf32> to vector<8x128xbf16>
    %c0_6 = arith.constant 0 : index
    %c0_7 = arith.constant 0 : index
    %9 = vector.load %arg4[%c0_6, %c0_7] : memref<128x128xbf16, #tpu.memory_space<vmem>>, vector<128x128xbf16>
    %cst_8 = arith.constant dense<0.000000e+00> : vector<8x128xf32>
    %10 = tpu.matmul %8, %9, %cst_8 {dimension_numbers = #tpu.dot_dimension_numbers<[1], [0], [0], [1], [0, 0, 1, 1], [], []>} : vector<8x128xbf16>, vector<128x128xbf16>, vector<8x128xf32> -> vector<8x128xf32>
    %c0_9 = arith.constant 0 : index
    %c0_10 = arith.constant 0 : index
    %11 = vector.load %arg5[%c0_9, %c0_10] : memref<1x128xf32, #tpu.memory_space<vmem>>, vector<1x128xf32>
    %12 = vector.broadcast %11 : vector<1x128xf32> to vector<8x128xf32>
    %13 = arith.addf %10, %12 : vector<8x128xf32>
    %cst_11 = arith.constant 0.000000e+00 : f32
    %14 = vector.broadcast %cst_11 : f32 to vector<8x128xf32>
    %15 = arith.maximumf %13, %14 : vector<8x128xf32>
    %16 = arith.truncf %15 : vector<8x128xf32> to vector<8x128xbf16>
    %c0_12 = arith.constant 0 : index
    %c0_13 = arith.constant 0 : index
    %17 = vector.load %arg6[%c0_12, %c0_13] : memref<128x128xbf16, #tpu.memory_space<vmem>>, vector<128x128xbf16>
    %cst_14 = arith.constant dense<0.000000e+00> : vector<8x128xf32>
    %18 = tpu.matmul %16, %17, %cst_14 {dimension_numbers = #tpu.dot_dimension_numbers<[1], [0], [0], [1], [0, 0, 1, 1], [], []>} : vector<8x128xbf16>, vector<128x128xbf16>, vector<8x128xf32> -> vector<8x128xf32>
    %c0_15 = arith.constant 0 : index
    %c0_16 = arith.constant 0 : index
    %19 = vector.load %arg7[%c0_15, %c0_16] : memref<1x128xf32, #tpu.memory_space<vmem>>, vector<1x128xf32>
    %20 = vector.broadcast %19 : vector<1x128xf32> to vector<8x128xf32>
    %21 = arith.addf %18, %20 : vector<8x128xf32>
    %c0_17 = arith.constant 0 : index
    %c0_18 = arith.constant 0 : index
    %22 = vector.load %arg8[%c0_17, %c0_18] : memref<8x128xf32, #tpu.memory_space<vmem>>, vector<8x128xf32>
    tpu.vector_store %arg8[%c0_17, %c0_18], %21 {strides = array<i32>} : memref<8x128xf32, #tpu.memory_space<vmem>>, vector<8x128xf32>,
    return
  }
  func.func @transform_0(%arg0: i32) -> (i32, i32) {
    %c0_i32 = arith.constant 0 : i32
    %c0_i32_0 = arith.constant 0 : i32
    return %arg0, %c0_i32 : i32, i32
  }
  func.func @transform_1(%arg0: i32) -> (i32, i32) {
    %c0_i32 = arith.constant 0 : i32
    %c0_i32_0 = arith.constant 0 : i32
    %c0_i32_1 = arith.constant 0 : i32
    return %c0_i32, %c0_i32_0 : i32, i32
  }
  func.func @transform_2(%arg0: i32) -> (i32, i32) {
    %c0_i32 = arith.constant 0 : i32
    %c0_i32_0 = arith.constant 0 : i32
    %c0_i32_1 = arith.constant 0 : i32
    return %c0_i32, %c0_i32_0 : i32, i32
  }
  func.func @transform_3(%arg0: i32) -> (i32, i32) {
    %c0_i32 = arith.constant 0 : i32
    %c0_i32_0 = arith.constant 0 : i32
    %c0_i32_1 = arith.constant 0 : i32
    return %c0_i32, %c0_i32_0 : i32, i32
  }
  func.func @transform_4(%arg0: i32) -> (i32, i32) {
    %c0_i32 = arith.constant 0 : i32
    %c0_i32_0 = arith.constant 0 : i32
    %c0_i32_1 = arith.constant 0 : i32
    return %c0_i32, %c0_i32_0 : i32, i32
  }
  func.func @transform_5(%arg0: i32) -> (i32, i32) {
    %c0_i32 = arith.constant 0 : i32
    %c0_i32_0 = arith.constant 0 : i32
    %c0_i32_1 = arith.constant 0 : i32
    return %c0_i32, %c0_i32_0 : i32, i32
  }
  func.func @transform_6(%arg0: i32) -> (i32, i32) {
    %c0_i32 = arith.constant 0 : i32
    %c0_i32_0 = arith.constant 0 : i32
    %c0_i32_1 = arith.constant 0 : i32
    return %c0_i32, %c0_i32_0 : i32, i32
  }
  func.func @transform_7(%arg0: i32) -> (i32, i32) {
    %c0_i32 = arith.constant 0 : i32
    %c0_i32_0 = arith.constant 0 : i32
    return %arg0, %c0_i32 : i32, i32
  }
}

</mosaic_0001>

<bundles_post_ra>
// kernel: dqn_forward.1
= control target key start
LH: loop header
LB: loop body
LE: loop exit
PB: predicated region body
PF: predicated region fallthrough
CT: control target
= control target key end

     0   :  { %12 = vsyncpa [#allocation3], 0  ;;  %s467_s0 = inlined_call_operand.vmem [shape: bf16[8,4], index: 0, kind: input, shape index: {}]   ;;  %s468_s1 = inlined_call_operand.vmem [shape: bf16[4,128], index: 1, kind: input, shape index: {}]   ;;  %s469_s2 = inlined_call_operand.vmem [shape: f32[1,128], index: 2, kind: input, shape index: {}]   ;;  %s470_s3 = inlined_call_operand.hbm [shape: bf16[128,128], index: 3, kind: input, shape index: {}]   ;;  %s471_s4 = inlined_call_operand.vmem [shape: f32[1,128], index: 4, kind: input, shape index: {}]   ;;  %s472_s5 = inlined_call_operand.hbm [shape: bf16[128,128], index: 5, kind: input, shape index: {}]   ;;  %s473_s6 = inlined_call_operand.vmem [shape: f32[1,128], index: 6, kind: input, shape index: {}]   ;;  %s474_s7 = inlined_call_operand.vmem [shape: f32[8,128], index: 7, kind: output, shape index: {}]  }
   0x1   :  { %s24_s26 = sshll.u32 %s470_s3, 4  ;;  %s25_s26 = int_to_ptr.hbm [resolvable:$true] %s24_s26 }
   0x2   :  { %13 = vsyncpa [#allocation5], 0  ;;  %s399_s27 = smov [#allocation2]   ;;  %s39_s8 = sshll.u32 %s472_s5, 4  ;;  %s40_s8 = int_to_ptr.hbm [resolvable:$true] %s39_s8 }
   0x3   :  { %s26_s28 = sshll.u32 %s399_s27, 4  ;;  %s400_s9 = smov 64   ;;  %s27_s28 = int_to_ptr.vmem [resolvable:$true] %s26_s28 }
   0x4   :  { %s401_s10 = smov 4   ;;  %s402_s11 = smov [#allocation4]  }
   0x5   :  { %32 = dma.hbm_to_vmem [thread:$0]  %s25_s26, 1024, %s27_s28, [#allocation3], %s400_s9, %s400_s9, %s401_s10  }
   0x6   :  { %s41_s12 = sshll.u32 %s402_s11, 4  ;;  %s42_s12 = int_to_ptr.vmem [resolvable:$true] %s41_s12 }
   0x7   :  { %47 = dma.hbm_to_vmem [thread:$0]  %s40_s8, 1024, %s42_s12, [#allocation5], %s400_s9, %s400_s9, %s401_s10  }
   0x8   :  { %395 = dma.done.wait [#allocation3], 1024  }
   0x9   :  { %396 = vsyncadd [#allocation3], 4294966272 }
   0xa   :  { %397 = dma.done.wait [#allocation5], 1024  }
   0xb   :  { %398 = vsyncadd [#allocation5], 4294966272  ;;  %vm69_vm0 = vcmask 1041408   ;;  %v60_v0 = vld [vmem:[%s468_s1] sm:$0x3]  ;;  %v331_v1 = vld [vmem:[#allocation2 + $0x38] sm:$0xff] }
   0xc   :  { %v71_v2 = vsel %vm69_vm0, %v60_v0, 0  ;;  %v59_v3 = vld [vmem:[%s467_s0] sm:$0xf]  ;;  %vm65_vm1 = vcmask 31744   ;;  %156 = vmatpush.bf16.msra.mxu1 %v331_v1  ;;  %v330_v4 = vld [vmem:[#allocation2 + $0x30] sm:$0xff]  ;;  %v329_v5 = vld [vmem:[#allocation2 + $0x28] sm:$0xff] }
   0xd   :  { %80 = vmatpush.bf16.msra.mxu0 %v71_v2  ;;  %v328_v6 = vld [vmem:[#allocation2 + $0x20] sm:$0xff]  ;;  %v327_v7 = vld [vmem:[#allocation2 + $0x18] sm:$0xff]  ;;  %v326_v8 = vld [vmem:[#allocation2 + $0x10] sm:$0xff] }
   0xe   :  { %v325_v9 = vld [vmem:[#allocation2 + $0x8] sm:$0xff]  ;;  %v324_v10 = vld [vmem:[#allocation2] sm:$0xff]  ;;  %v339_v11 = vld [vmem:[#allocation4 + $0x38] sm:$0xff] }
   0xf   :  { %239 = vmatpush.bf16.msra.mxu2 %v339_v11  ;;  %v338_v12 = vld [vmem:[#allocation4 + $0x30] sm:$0xff]  ;;  %v337_v13 = vld [vmem:[#allocation4 + $0x28] sm:$0xff]  ;;  %v336_v14 = vld [vmem:[#allocation4 + $0x20] sm:$0xff] }
  0x10   :  { %259 = vmatmul.msk.bf16.vlgmr.msra.gmra.mxu0 %vm65_vm1, %v59_v3  ;;  %157 = vmatpush.bf16.msra.mxu1 %v330_v4  ;;  %v335_v15 = vld [vmem:[#allocation4 + $0x18] sm:$0xff]  ;;  %v334_v16 = vld [vmem:[#allocation4 + $0x10] sm:$0xff]  ;;  %v344_v17 = vld [vmem:[%s469_s2] ss:$0 sm:$0xff] }
  0x11   :  { %v333_v23 = vld [vmem:[#allocation4 + $0x8] sm:$0xff]  ;;  %v332_v24 = vld [vmem:[#allocation4] sm:$0xff] }
  0x12   :  { %v345_v25 = vld [vmem:[%s471_s4] ss:$0 sm:$0xff] }
  0x13   :  { %240 = vmatpush.bf16.msra.mxu2 %v338_v12  ;;  %v346_v31 = vld [vmem:[%s473_s6] ss:$0 sm:$0xff] }
  0x14   :  { %158 = vmatpush.bf16.msra.mxu1 %v329_v5 }
  0x17   :  { %241 = vmatpush.bf16.msra.mxu2 %v337_v13 }
  0x18   :  { %159 = vmatpush.bf16.msra.mxu1 %v328_v6 }
  0x1b   :  { %242 = vmatpush.bf16.msra.mxu2 %v336_v14 }
  0x1c   :  { %160 = vmatpush.bf16.msra.mxu1 %v327_v7 }
  0x1f   :  { %243 = vmatpush.bf16.msra.mxu2 %v335_v15 }
  0x20   :  { %161 = vmatpush.bf16.msra.mxu1 %v326_v8 }
  0x23   :  { %244 = vmatpush.bf16.msra.mxu2 %v334_v16 }
  0x24   :  { %162 = vmatpush.bf16.msra.mxu1 %v325_v9 }
  0x27   :  { %245 = vmatpush.bf16.msra.mxu2 %v333_v23 }
  0x28   :  { %163 = vmatpush.bf16.msra.mxu1 %v324_v10 }
  0x2b   :  { %246 = vmatpush.bf16.msra.mxu2 %v332_v24 }
  0x8d   :  { %v82_v18 = vpop.f32.mrf.mxu0 }
  0x8e   :  { %v83_v19 = vadd.f32 %v344_v17, %v82_v18 }
  0x90   :  { %v86_v20 = vmax.f32 %v83_v19, 0.0 }
  0x92   :  { %v87_v21 = vpack.c.bf16 %v86_v20, %v86_v20 }
  0x94   :  { %164 = vmatmul.bf16.vlgmr.msra.gmra.mxu1 %v87_v21 }
  0x95   :  { %v84_v22 = vpop.f32.mrf.mxu0 }
 0x111   :  { %v165_v26 = vpop.f32.mrf.mxu1 }
 0x112   :  { %v166_v27 = vadd.f32 %v345_v25, %v165_v26 }
 0x114   :  { %v169_v28 = vmax.f32 %v166_v27, 0.0 }
 0x116   :  { %v170_v29 = vpack.c.bf16 %v169_v28, %v169_v28 }
 0x118   :  { %247 = vmatmul.bf16.vlgmr.msra.gmra.mxu2 %v170_v29 }
 0x119   :  { %v167_v30 = vpop.f32.mrf.mxu1 }
 0x19b   :  { %v248_v32 = vpop.f32.mrf.mxu2 }
 0x19c   :  { %v249_v33 = vadd.f32 %v346_v31, %v248_v32 }
 0x19e   :  { %252 = vst [vmem:[%s474_s7] sm:$0xff] %v249_v33 }
 0x1a3   :  { %v250_v34 = vpop.f32.mrf.mxu2 }
 0x1a4   :  { %257 = vsyncpa [#allocation3], 1 }
 0x1a5   :  { %258 = vsyncpa [#allocation5], 1 }

</bundles_post_ra>
